<compile_context>
chip_gen: v6e
topology: v6e:2x2x1
jax: 0.10.0
libtpu: 0.0.40
codegen_flags: <defaults>
</compile_context>

<pallas_src>
import jax
import jax.numpy as jnp
from jax.experimental import pallas as pl
from jax.experimental.pallas import tpu as pltpu


def _cat_tanh_kernel(y_ref, o_ref):
    # y_ref: (B, F) input block; o_ref: (2*B, F) output block.
    # tanh once, duplicate along rows (== tanh(cat(y, y, dim=0))),
    # single unmasked full-block store.
    t = jnp.tanh(y_ref[...])
    o_ref[...] = jnp.concatenate([t, t], axis=0)


def model_forward(x: jax.Array) -> jax.Array:
    """Pallas equivalent of Model.forward."""
    B = x.shape[0]
    F = 1
    for d in x.shape[1:]:
        F *= d
    y = x.reshape(B, F)  # glue reshape (torch .view)

    out = pl.pallas_call(
        _cat_tanh_kernel,
        out_shape=jax.ShapeDtypeStruct((2 * B, F), y.dtype),
        # Full-array blocks, explicitly resident in VMEM; no grid.
        in_specs=[pl.BlockSpec(memory_space=pltpu.MemorySpace.VMEM)],
        out_specs=pl.BlockSpec(memory_space=pltpu.MemorySpace.VMEM),
    )(y)
    return out


def model_forward_ref(x: jax.Array) -> jax.Array:
    y = x.reshape(x.shape[0], -1)
    y1 = jnp.concatenate((y, y), axis=0)
    return jnp.tanh(y1)


if __name__ == "__main__":
    key = jax.random.PRNGKey(0)
    # Shapes consistent with the module: x = torch.rand((4, 5, 3))
    x = jax.random.uniform(key, (4, 5, 3), dtype=jnp.float32)

    out = model_forward(x)
    out = jax.block_until_ready(out)

    ref = model_forward_ref(x)
    assert out.shape == (8, 15), out.shape
    assert jnp.allclose(out, ref, atol=1e-6, rtol=1e-6)

    print("KERNEL_OK")
</pallas_src>

<mosaic_0001>
module attributes {stable_mosaic.version = 11 : i64} {
  func.func @_cat_tanh_kernel(%arg0: memref<4x15xf32, #tpu.memory_space<vmem>>, %arg1: memref<8x15xf32, #tpu.memory_space<vmem>>) attributes {dimension_semantics = [], scalar_prefetch = 0 : i64, scratch_operands = 0 : i64, tpu.core_type = #tpu.core_type<tc>} {
    %c0 = arith.constant 0 : index
    %c0_0 = arith.constant 0 : index
    %0 = vector.load %arg0[%c0, %c0_0] : memref<4x15xf32, #tpu.memory_space<vmem>>, vector<4x15xf32>
    %1 = math.tanh %0 : vector<4x15xf32>
    %2 = tpu.concatenate %1, %1 in 0 : vector<4x15xf32>, vector<4x15xf32> -> vector<8x15xf32>
    %c0_1 = arith.constant 0 : index
    %c0_2 = arith.constant 0 : index
    %3 = vector.load %arg1[%c0_1, %c0_2] : memref<8x15xf32, #tpu.memory_space<vmem>>, vector<8x15xf32>
    tpu.vector_store %arg1[%c0_1, %c0_2], %2 {strides = array<i32>} : memref<8x15xf32, #tpu.memory_space<vmem>>, vector<8x15xf32>,
    return
  }
}

</mosaic_0001>

<bundles_post_ra>
// kernel: tpu_custom_call.1
= control target key start
LH: loop header
LB: loop body
LE: loop exit
PB: predicated region body
PF: predicated region fallthrough
CT: control target
= control target key end

     0   :  { %6 = vsyncpa [#allocation3], 0  ;;  %s111_s0 = inlined_call_operand.hbm [shape: f32[4,15], index: 0, kind: input, shape index: {}]   ;;  %s112_s1 = inlined_call_operand.hbm [shape: f32[8,15], index: 1, kind: output, shape index: {}]  }
   0x1   :  { %7 = vsyncpa [#allocation4], 0  ;;  %s93_s6 = smov [#allocation2]  }
   0x2   :  { %s14_s7 = sshll.u32 %s93_s6, 4  ;;  %s15_s7 = int_to_ptr.vmem [resolvable:$true] %s14_s7 }
   0x3   :  { %s57_s8 = scalar_lea.vmem %s15_s7, 64  ;;  %p62_p1 = scmp.lt.s32.totalorder %s15_s7, %s15_s7 }
   0x4   :  { %p58_p0 = scmp.ne.s32.totalorder %s15_s7, %s57_s8  ;;  %p63_p2 = scmp.lt.s32.totalorder %s57_s8, %s57_s8 }
   0x6   :  { %p64_p3 = por %p63_p2, %p62_p1 }
   0x8   :  { %p65_p4 = pnand %p64_p3, %p58_p0 }
   0xa   :  { %68 = shalt.err (!%p65_p4)
}
   0xb   :  { %17 = dma.hbm_to_vmem [thread:$0]  %s111_s0, 64, %s15_s7, [#allocation3]  }
   0xc   :  { %89 = dma.done.wait [#allocation3], 64  }
   0xd   :  { %90 = vsyncadd [#allocation3], 4294967232  ;;  %v21_v0 = vld [vmem:[#allocation2] sm:$0xf]  ;;  %s94_s11 = smov [#allocation5]   ;;  %vm26_vm0 = vcmask 1043456  }
   0xe   :  { %47 = vtanh.f32 %v21_v0  ;;  %s36_s12 = sshll.u32 %s94_s11, 4  ;;  %vm28_vm1 = vcmask 121856   ;;  %s37_s12 = int_to_ptr.vmem [resolvable:$true] %s36_s12 }
   0xf   :  { %s69_s13 = scalar_lea.vmem %s37_s12, 128  ;;  %p74_p6 = scmp.lt.s32.totalorder %s37_s12, %s37_s12 }
  0x10   :  { %p70_p5 = scmp.ne.s32.totalorder %s37_s12, %s69_s13  ;;  %p75_p7 = scmp.lt.s32.totalorder %s69_s13, %s69_s13 }
  0x12   :  { %p76_p8 = por %p75_p7, %p74_p6 }
  0x14   :  { %p77_p9 = pnand %p76_p8, %p70_p5 }
  0x1b   :  { %v48_v1 = vpop.eup %47 }
  0x1c   :  { %v24_v2 = vrot.slane %v48_v1, 4 }
  0x1e   :  { %v27_v3 = vsel %vm26_vm0, %v48_v1, %v24_v2 }
  0x1f   :  { %29 = vst.msk [vmem:[#allocation5] sm:$0xff] %vm28_vm1, %v27_v3 }
  0x20   :  { %80 = shalt.err (!%p77_p9)
}
  0x21   :  { %39 = dma.vmem_to_hbm [thread:$0]  %s37_s12, 128, %s112_s1, [#allocation4]  }
  0x22   :  { %91 = dma.done.wait [#allocation4], 128  }
  0x23   :  { %92 = vsyncadd [#allocation4], 4294967168 }
  0x24   :  { %43 = vsyncpa [#allocation3], 1 }
  0x25   :  { %44 = vsyncpa [#allocation4], 1 }

</bundles_post_ra>
